<compile_context>
chip_gen: v7x
topology: tpu7x:2x2x1
jax: 0.10.0
libtpu: 0.0.40
codegen_flags: <defaults>
</compile_context>

<pallas_src>
import math

import jax
import jax.numpy as jnp
from jax.experimental import pallas as pl
from jax.experimental.pallas import tpu as pltpu


def _round_up(x: int, m: int) -> int:
    return (x + m - 1) // m * m


def _pad2d(a, rows, cols, dtype):
    """Zero-pad a 2-D array to [rows, cols] (no-op if already that shape/dtype)."""
    if a.shape == (rows, cols) and a.dtype == dtype:
        return a
    out = jnp.zeros((rows, cols), dtype)
    return out.at[:a.shape[0], :a.shape[1]].set(a.astype(dtype))


def _lstm_cell_kernel(xh_ref, c_ref, w_ref, b_ref, h_out_ref, c_out_ref):
    """Fused LSTM cell step.

    xh_ref : [B_pad, input_size + hidden_p]      concat of x_t and padded h_{t-1}
    c_ref  : [B_pad, hidden_p]                   previous cell state (f32)
    w_ref  : [input_size + hidden_p, 4*hidden_p] fused [Wx^T ; Wh^T], gate-blocked
    b_ref  : [1, 4*hidden_p]                     fused bias bx + bh
    outputs: h_t, c_t  each [B_pad, hidden_p]
    """
    hp = c_ref.shape[1]  # padded hidden, multiple of 128

    # Single MXU matmul covers both the input and recurrent projections.
    gates = (
        jnp.dot(xh_ref[...], w_ref[...], preferred_element_type=jnp.float32)
        + b_ref[...]
    )

    # hp % 128 == 0 -> each gate slice is a clean, lane-aligned vreg group.
    i_t = jax.nn.sigmoid(gates[:, 0 * hp:1 * hp])
    f_t = jax.nn.sigmoid(gates[:, 1 * hp:2 * hp])
    g_t = jnp.tanh(gates[:, 2 * hp:3 * hp])
    o_t = jax.nn.sigmoid(gates[:, 3 * hp:4 * hp])

    c_t = f_t * c_ref[...] + i_t * g_t          # f32 cell state
    h_t = o_t * jnp.tanh(c_t)

    c_out_ref[...] = c_t.astype(c_out_ref.dtype)
    h_out_ref[...] = h_t.astype(h_out_ref.dtype)


def prepare_lstm_params(wx, bx, wh, bh, dtype=jnp.float32):
    """One-time packing of PyTorch-layout parameters (NOT in the hot path).

    wx: [4*hidden, input_size], wh: [4*hidden, hidden], bx/bh: [4*hidden]
    Returns:
      w_fused: [input_size + hidden_p, 4*hidden_p]
      b_fused: [1, 4*hidden_p]
    where hidden_p = hidden rounded up to 128 so every gate block is
    lane-aligned.  Padded rows/columns are zero (they produce zero gate
    pre-activations and zero padded state, which is sliced away afterwards).
    """
    four_h, input_size = wx.shape
    hidden = four_h // 4
    hidden_p = _round_up(hidden, 128)
    k = input_size + hidden_p

    wx = jnp.asarray(wx, dtype)
    wh = jnp.asarray(wh, dtype)
    bsum = jnp.asarray(bx, dtype) + jnp.asarray(bh, dtype)

    w = jnp.zeros((k, 4 * hidden_p), dtype)
    b = jnp.zeros((1, 4 * hidden_p), dtype)
    for g in range(4):
        rows = slice(g * hidden, (g + 1) * hidden)
        cols = slice(g * hidden_p, g * hidden_p + hidden)
        w = w.at[:input_size, cols].set(wx[rows, :].T)
        w = w.at[input_size:input_size + hidden, cols].set(wh[rows, :].T)
        b = b.at[0, cols].set(bsum[rows])
    return w, b


@jax.jit
def lstm_cell_forward(x_t, h_t_1, c_t_1, w_fused, b_fused):
    """Single LSTM cell step using pre-packed params. Returns (h_t, c_t), [B, hidden]."""
    B, input_size = x_t.shape
    hidden = h_t_1.shape[1]
    hidden_p = b_fused.shape[1] // 4
    B_pad = _round_up(B, 8)  # f32 sublane multiple

    x_p = _pad2d(x_t, B_pad, input_size, w_fused.dtype)
    h_p = _pad2d(h_t_1, B_pad, hidden_p, w_fused.dtype)
    c_p = _pad2d(c_t_1, B_pad, hidden_p, jnp.float32)
    xh = jnp.concatenate([x_p, h_p], axis=1)  # [B_pad, input_size + hidden_p]

    vmem = pltpu.MemorySpace.VMEM
    h_out, c_out = pl.pallas_call(
        _lstm_cell_kernel,
        out_shape=(
            jax.ShapeDtypeStruct((B_pad, hidden_p), x_t.dtype),    # h_t
            jax.ShapeDtypeStruct((B_pad, hidden_p), jnp.float32),  # c_t (kept f32)
        ),
        in_specs=[
            pl.BlockSpec(memory_space=vmem),  # [x | h] concat
            pl.BlockSpec(memory_space=vmem),  # c_{t-1}
            pl.BlockSpec(memory_space=vmem),  # fused weight
            pl.BlockSpec(memory_space=vmem),  # fused bias
        ],
        out_specs=(
            pl.BlockSpec(memory_space=vmem),
            pl.BlockSpec(memory_space=vmem),
        ),
        # Reuse the previous cell-state buffer for the new cell state: one less
        # allocation / HBM writeback stream when stepping a recurrence.
        input_output_aliases={1: 1},
    )(xh, c_p, w_fused, b_fused)

    return h_out[:B, :hidden], c_out[:B, :hidden]


def _reference_forward(x_t, h_t_1, c_t_1, wx, bx, wh, bh):
    """Pure-JAX reference mirroring the PyTorch module's forward."""
    gates = x_t @ wx.T + bx + h_t_1 @ wh.T + bh
    i_t, f_t, g_t, o_t = jnp.split(gates, 4, axis=1)
    i_t = jax.nn.sigmoid(i_t)
    f_t = jax.nn.sigmoid(f_t)
    g_t = jnp.tanh(g_t)
    o_t = jax.nn.sigmoid(o_t)
    c_t = f_t * c_t_1 + i_t * g_t
    h_t = o_t * jnp.tanh(c_t)
    return h_t, c_t


if __name__ == "__main__":
    # Small shapes consistent with the module: batch=2, input_size=16, hidden=32.
    batch, input_size, hidden_size = 2, 16, 32
    key = jax.random.PRNGKey(0)
    k_x, k_h, k_c, k_wx, k_bx, k_wh, k_bh = jax.random.split(key, 7)

    # Deterministic Xavier-style init matching reset_parameters():
    # uniform(-sqrt(3/hidden), +sqrt(3/hidden)) for ALL parameters.
    size = math.sqrt(3.0 / hidden_size)

    x_t = jax.random.normal(k_x, (batch, input_size), dtype=jnp.float32)
    h_t_1 = jax.random.normal(k_h, (batch, hidden_size), dtype=jnp.float32)
    c_t_1 = jax.random.normal(k_c, (batch, hidden_size), dtype=jnp.float32)

    wx = jax.random.uniform(k_wx, (4 * hidden_size, input_size),
                            minval=-size, maxval=size, dtype=jnp.float32)
    bx = jax.random.uniform(k_bx, (4 * hidden_size,),
                            minval=-size, maxval=size, dtype=jnp.float32)
    wh = jax.random.uniform(k_wh, (4 * hidden_size, hidden_size),
                            minval=-size, maxval=size, dtype=jnp.float32)
    bh = jax.random.uniform(k_bh, (4 * hidden_size,),
                            minval=-size, maxval=size, dtype=jnp.float32)

    # One-time parameter packing (outside any per-step / per-timestep path).
    w_fused, b_fused = prepare_lstm_params(wx, bx, wh, bh)
    w_fused, b_fused = jax.block_until_ready((w_fused, b_fused))

    h_t, c_t = lstm_cell_forward(x_t, h_t_1, c_t_1, w_fused, b_fused)
    jax.block_until_ready((h_t, c_t))

    h_ref, c_ref = _reference_forward(x_t, h_t_1, c_t_1, wx, bx, wh, bh)
    assert jnp.allclose(h_t, h_ref, atol=1e-5, rtol=1e-5)
    assert jnp.allclose(c_t, c_ref, atol=1e-5, rtol=1e-5)

    print("KERNEL_OK")
</pallas_src>

<mosaic_0001>
module attributes {stable_mosaic.version = 11 : i64} {
  func.func @_lstm_cell_kernel(%arg0: memref<8x144xf32, #tpu.memory_space<vmem>>, %arg1: memref<8x128xf32, #tpu.memory_space<vmem>>, %arg2: memref<144x512xf32, #tpu.memory_space<vmem>>, %arg3: memref<1x512xf32, #tpu.memory_space<vmem>>, %arg4: memref<8x128xf32, #tpu.memory_space<vmem>>, %arg5: memref<8x128xf32, #tpu.memory_space<vmem>>) attributes {dimension_semantics = [], scalar_prefetch = 0 : i64, scratch_operands = 0 : i64, tpu.core_type = #tpu.core_type<tc>} {
    %c0 = arith.constant 0 : index
    %c0_0 = arith.constant 0 : index
    %0 = vector.load %arg0[%c0, %c0_0] : memref<8x144xf32, #tpu.memory_space<vmem>>, vector<8x144xf32>
    %c0_1 = arith.constant 0 : index
    %c0_2 = arith.constant 0 : index
    %1 = vector.load %arg2[%c0_1, %c0_2] : memref<144x512xf32, #tpu.memory_space<vmem>>, vector<144x512xf32>
    %cst = arith.constant dense<0.000000e+00> : vector<8x512xf32>
    %2 = tpu.matmul %0, %1, %cst {dimension_numbers = #tpu.dot_dimension_numbers<[1], [0], [0], [1], [0, 0, 1, 1], [], []>} : vector<8x144xf32>, vector<144x512xf32>, vector<8x512xf32> -> vector<8x512xf32>
    %c0_3 = arith.constant 0 : index
    %c0_4 = arith.constant 0 : index
    %3 = vector.load %arg3[%c0_3, %c0_4] : memref<1x512xf32, #tpu.memory_space<vmem>>, vector<1x512xf32>
    %4 = vector.broadcast %3 : vector<1x512xf32> to vector<8x512xf32>
    %5 = arith.addf %2, %4 : vector<8x512xf32>
    %6 = vector.extract_strided_slice %5 {offsets = [0, 0], sizes = [8, 128], strides = [1, 1]} : vector<8x512xf32> to vector<8x128xf32>
    %7 = arith.negf %6 : vector<8x128xf32>
    %8 = math.exp %7 : vector<8x128xf32>
    %cst_5 = arith.constant 1.000000e+00 : f32
    %9 = vector.broadcast %cst_5 : f32 to vector<8x128xf32>
    %10 = arith.addf %9, %8 : vector<8x128xf32>
    %11 = arith.divf %9, %10 : vector<8x128xf32>
    %12 = vector.extract_strided_slice %5 {offsets = [0, 128], sizes = [8, 128], strides = [1, 1]} : vector<8x512xf32> to vector<8x128xf32>
    %13 = arith.negf %12 : vector<8x128xf32>
    %14 = math.exp %13 : vector<8x128xf32>
    %cst_6 = arith.constant 1.000000e+00 : f32
    %15 = vector.broadcast %cst_6 : f32 to vector<8x128xf32>
    %16 = arith.addf %15, %14 : vector<8x128xf32>
    %17 = arith.divf %15, %16 : vector<8x128xf32>
    %18 = vector.extract_strided_slice %5 {offsets = [0, 256], sizes = [8, 128], strides = [1, 1]} : vector<8x512xf32> to vector<8x128xf32>
    %19 = math.tanh %18 : vector<8x128xf32>
    %20 = vector.extract_strided_slice %5 {offsets = [0, 384], sizes = [8, 128], strides = [1, 1]} : vector<8x512xf32> to vector<8x128xf32>
    %21 = arith.negf %20 : vector<8x128xf32>
    %22 = math.exp %21 : vector<8x128xf32>
    %cst_7 = arith.constant 1.000000e+00 : f32
    %23 = vector.broadcast %cst_7 : f32 to vector<8x128xf32>
    %24 = arith.addf %23, %22 : vector<8x128xf32>
    %25 = arith.divf %23, %24 : vector<8x128xf32>
    %c0_8 = arith.constant 0 : index
    %c0_9 = arith.constant 0 : index
    %26 = vector.load %arg1[%c0_8, %c0_9] : memref<8x128xf32, #tpu.memory_space<vmem>>, vector<8x128xf32>
    %27 = arith.mulf %17, %26 : vector<8x128xf32>
    %28 = arith.mulf %11, %19 : vector<8x128xf32>
    %29 = arith.addf %27, %28 : vector<8x128xf32>
    %30 = math.tanh %29 : vector<8x128xf32>
    %31 = arith.mulf %25, %30 : vector<8x128xf32>
    %c0_10 = arith.constant 0 : index
    %c0_11 = arith.constant 0 : index
    %32 = vector.load %arg5[%c0_10, %c0_11] : memref<8x128xf32, #tpu.memory_space<vmem>>, vector<8x128xf32>
    tpu.vector_store %arg5[%c0_10, %c0_11], %29 {strides = array<i32>} : memref<8x128xf32, #tpu.memory_space<vmem>>, vector<8x128xf32>,
    %c0_12 = arith.constant 0 : index
    %c0_13 = arith.constant 0 : index
    %33 = vector.load %arg4[%c0_12, %c0_13] : memref<8x128xf32, #tpu.memory_space<vmem>>, vector<8x128xf32>
    tpu.vector_store %arg4[%c0_12, %c0_13], %31 {strides = array<i32>} : memref<8x128xf32, #tpu.memory_space<vmem>>, vector<8x128xf32>,
    return
  }
}

</mosaic_0001>

<bundles_post_ra>
// kernel: lstm_cell_forward.1
= control target key start
LH: loop header
LB: loop body
LE: loop exit
PB: predicated region body
PF: predicated region fallthrough
CT: control target
= control target key end

     0   :  { %11 = vsyncpa [#allocation3], 0  ;;  %s431_s18 = smov [#allocation2]   ;;  %s496_s0 = inlined_call_operand.vmem [shape: f32[8,144], index: 0, kind: input, shape index: {}]   ;;  %s497_s1 = inlined_call_operand.vmem [shape: f32[8,128], index: 1, kind: input, shape index: {}, may-alias: {1,5}]   ;;  %s498_s2 = inlined_call_operand.hbm [shape: f32[144,512], index: 2, kind: input, shape index: {}]   ;;  %s499_s3 = inlined_call_operand.vmem [shape: f32[1,512], index: 3, kind: input, shape index: {}]   ;;  %s500_s4 = inlined_call_operand.vmem [shape: f32[8,128], index: 4, kind: output, shape index: {0}]   ;;  %s501_s5 = inlined_call_operand.vmem [shape: f32[8,128], index: 5, kind: output, shape index: {1}, may-alias: {1,5}]  }
   0x1   :  { %s21_s19 = sshll.u32 %s431_s18, 4  ;;  %s407_s22 = scalar_lea.hbm %s498_s2, 9216  ;;  %s22_s19 = int_to_ptr.vmem [resolvable:$true] %s21_s19 }
   0x2   :  { %p408_p0 = scmp.ne.s32.totalorder %s498_s2, %s407_s22  ;;  %p411_p1 = scmp.lt.u32.totalorder %s407_s22, %s498_s2 }
   0x4   :  { %p413_p2 = pnand %p411_p1, %p408_p0 }
   0x6   :  { %416 = shalt.err (!%p413_p2)
}
   0x7   :  { %s417_s27 = scalar_lea.vmem %s22_s19, 9216  ;;  %p422_p4 = scmp.lt.s32.totalorder %s22_s19, %s22_s19 }
   0x8   :  { %p418_p3 = scmp.ne.s32.totalorder %s22_s19, %s417_s27  ;;  %p423_p5 = scmp.lt.s32.totalorder %s417_s27, %s417_s27 }
   0xa   :  { %p424_p6 = por %p423_p5, %p422_p4 }
   0xc   :  { %p425_p7 = pnand %p424_p6, %p418_p3 }
   0xe   :  { %428 = shalt.err (!%p425_p7)
}
   0xf   :  { %s432_s28 = smov 512   ;;  %s433_s29 = smov 32  }
  0x10   :  { %27 = dma.hbm_to_vmem [thread:$0]  %s498_s2, 9216, %s22_s19, [#allocation3], %s432_s28, %s432_s28, %s433_s29  }
  0x11   :  { %429 = dma.done.wait [#allocation3], 9216  }
  0x12   :  { %430 = vsyncadd [#allocation3], 4294958080  ;;  %v36_v0 = vld [vmem:[#allocation2 + $0x8] sm:$0xff]  ;;  %v35_v2 = vld [vmem:[#allocation2] sm:$0xff]  ;;  %vm129_vm0 = vcmask 130048  }
  0x13   :  { %v40_v1 = vld [vmem:[#allocation2 + $0x28] sm:$0xff]  ;;  %v39_v4 = vld [vmem:[#allocation2 + $0x20] sm:$0xff]  ;;  %v38_v18 = vld [vmem:[#allocation2 + $0x18] sm:$0xff] }
  0x14   :  { %v316_v3 = vpack.c.bf16 %v40_v1, %v36_v0  ;;  %v44_v5 = vld [vmem:[#allocation2 + $0x48] sm:$0xff]  ;;  %v318_v7 = vpack.c.bf16 %v39_v4, %v35_v2  ;;  %v43_v9 = vld [vmem:[#allocation2 + $0x40] sm:$0xff]  ;;  %v42_v19 = vld [vmem:[#allocation2 + $0x38] sm:$0xff] }
  0x15   :  { %v48_v6 = vld [vmem:[#allocation2 + $0x68] sm:$0xff]  ;;  %v47_v10 = vld [vmem:[#allocation2 + $0x60] sm:$0xff]  ;;  %v352_v21 = vpack.c.bf16 %v42_v19, %v38_v18  ;;  %v37_v22 = vld [vmem:[#allocation2 + $0x10] sm:$0xff] }
  0x16   :  { %v320_v8 = vpack.c.bf16 %v48_v6, %v44_v5  ;;  %v52_v11 = vld [vmem:[#allocation2 + $0x88] sm:$0xff]  ;;  %317 = vmatprep.subr.bf16.mxu0 %v316_v3  ;;  %v322_v13 = vpack.c.bf16 %v47_v10, %v43_v9  ;;  %v51_v14 = vld [vmem:[#allocation2 + $0x80] sm:$0xff]  ;;  %v41_v23 = vld [vmem:[#allocation2 + $0x30] sm:$0xff] }
  0x17   :  { %v56_v12 = vld [vmem:[#allocation2 + $0xa8] sm:$0xff]  ;;  %319 = vmatpush1.bf16.msra.mxu0 %v318_v7  ;;  %v55_v15 = vld [vmem:[#allocation2 + $0xa0] sm:$0xff]  ;;  %v354_v24 = vpack.c.bf16 %v41_v23, %v37_v22  ;;  %353 = vmatprep.subr.bf16.mxu1 %v352_v21  ;;  %v46_v26 = vld [vmem:[#allocation2 + $0x58] sm:$0xff] }
  0x18   :  { %321 = vmatprep.subr.bf16.mxu0 %v320_v8  ;;  %v324_v16 = vpack.c.bf16 %v56_v12, %v52_v11  ;;  %v60_v17 = vld [vmem:[#allocation2 + $0xc8] sm:$0xff]  ;;  %v326_v25 = vpack.c.bf16 %v55_v15, %v51_v14  ;;  %v50_v27 = vld [vmem:[#allocation2 + $0x78] sm:$0xff]  ;;  %v45_v28 = vld [vmem:[#allocation2 + $0x50] sm:$0xff] }
  0x19   :  { %v64_v20 = vld [vmem:[#allocation2 + $0xe8] sm:$0xff]  ;;  %v59_v30 = vld [vmem:[#allocation2 + $0xc0] sm:$0xff]  ;;  %355 = vmatpush1.bf16.msra.mxu1 %v354_v24  ;;  %v356_v32 = vpack.c.bf16 %v50_v27, %v46_v26  ;;  %v49_v33 = vld [vmem:[#allocation2 + $0x70] sm:$0xff] }
  0x1a   :  { %v328_v29 = vpack.c.bf16 %v64_v20, %v60_v17  ;;  %v63_v31 = vld [vmem:[#allocation2 + $0xe0] sm:$0xff]  ;;  %v68_v34 = vld [vmem:[#allocation2 + $0x108] sm:$0xff]  ;;  %v358_v36 = vpack.c.bf16 %v49_v33, %v45_v28  ;;  %v54_v37 = vld [vmem:[#allocation2 + $0x98] sm:$0xff] }
  0x1b   :  { %323 = vmatpush1.bf16.msra.mxu0 %v322_v13  ;;  %v72_v35 = vld [vmem:[#allocation2 + $0x128] sm:$0xff]  ;;  %357 = vmatprep.subr.bf16.mxu1 %v356_v32  ;;  %v58_v38 = vld [vmem:[#allocation2 + $0xb8] sm:$0xff]  ;;  %v53_v39 = vld [vmem:[#allocation2 + $0x90] sm:$0xff]  ;;  %v330_v41 = vpack.c.bf16 %v63_v31, %v59_v30 }
  0x1c   :  { %325 = vmatprep.subr.bf16.mxu0 %v324_v16  ;;  %v57_v40 = vld [vmem:[#allocation2 + $0xb0] sm:$0xff]  ;;  %v67_v42 = vld [vmem:[#allocation2 + $0x100] sm:$0xff]  ;;  %v360_v44 = vpack.c.bf16 %v58_v38, %v54_v37  ;;  %v332_v45 = vpack.c.bf16 %v72_v35, %v68_v34  ;;  %v76_v46 = vld [vmem:[#allocation2 + $0x148] sm:$0xff] }
  0x1d   :  { %v71_v43 = vld [vmem:[#allocation2 + $0x120] sm:$0xff]  ;;  %359 = vmatpush1.bf16.msra.mxu1 %v358_v36  ;;  %v362_v47 = vpack.c.bf16 %v57_v40, %v53_v39  ;;  %v62_v48 = vld [vmem:[#allocation2 + $0xd8] sm:$0xff]  ;;  %v80_v50 = vld [vmem:[#allocation2 + $0x168] sm:$0xff] }
  0x1e   :  { %v66_v49 = vld [vmem:[#allocation2 + $0xf8] sm:$0xff]  ;;  %361 = vmatprep.subr.bf16.mxu1 %v360_v44  ;;  %v61_v52 = vld [vmem:[#allocation2 + $0xd0] sm:$0xff]  ;;  %v334_v54 = vpack.c.bf16 %v71_v43, %v67_v42  ;;  %v336_v57 = vpack.c.bf16 %v80_v50, %v76_v46  ;;  %v75_v58 = vld [vmem:[#allocation2 + $0x140] sm:$0xff]  ;;  %v109_v46 = vlaneseq }
  0x1f   :  { %327 = vmatpush1.bf16.msra.mxu0 %v326_v25  ;;  %v364_v51 = vpack.c.bf16 %v66_v49, %v62_v48  ;;  %v65_v53 = vld [vmem:[#allocation2 + $0xf0] sm:$0xff]  ;;  %v70_v55 = vld [vmem:[#allocation2 + $0x118] sm:$0xff]  ;;  %v79_v59 = vld [vmem:[#allocation2 + $0x160] sm:$0xff] }
  0x20   :  { %329 = vmatprep.subr.bf16.mxu0 %v328_v29  ;;  %v74_v56 = vld [vmem:[#allocation2 + $0x138] sm:$0xff]  ;;  %v84_v60 = vld [vmem:[#allocation2 + $0x188] sm:$0xff]  ;;  %v366_v61 = vpack.c.bf16 %v65_v53, %v61_v52  ;;  %v69_v0 = vld [vmem:[#allocation2 + $0x110] sm:$0xff]  ;;  %v338_v5 = vpack.c.bf16 %v79_v59, %v75_v58 }
  0x21   :  { %363 = vmatpush1.bf16.msra.mxu1 %v362_v47  ;;  %v88_v62 = vld [vmem:[#allocation2 + $0x1a8] sm:$0xff]  ;;  %v368_v63 = vpack.c.bf16 %v74_v56, %v70_v55  ;;  %v73_v1 = vld [vmem:[#allocation2 + $0x130] sm:$0xff]  ;;  %v78_v2 = vld [vmem:[#allocation2 + $0x158] sm:$0xff]  ;;  %v110_v47 = vshrl.u32 %v109_v46, 7 }
  0x22   :  { %365 = vmatprep.subr.bf16.mxu1 %v364_v51  ;;  %v82_v3 = vld [vmem:[#allocation2 + $0x178] sm:$0xff]  ;;  %v34_v4 = vld [vmem:[%s496_s0 + $0x8] sm:$0xff]  ;;  %v340_v6 = vpack.c.bf16 %v88_v62, %v84_v60  ;;  %v83_v7 = vld [vmem:[#allocation2 + $0x180] sm:$0xff]  ;;  %v370_v10 = vpack.c.bf16 %v73_v1, %v69_v0 }
  0x23   :  { %331 = vmatpush1.bf16.msra.mxu0 %v330_v41  ;;  %311 = vmatprep.mubr.msk.f32.mxu0 %vm129_vm0, %v34_v4  ;;  %v87_v8 = vld [vmem:[#allocation2 + $0x1a0] sm:$0xff]  ;;  %v92_v9 = vld [vmem:[#allocation2 + $0x1c8] sm:$0xff]  ;;  %v372_v12 = vpack.c.bf16 %v82_v3, %v78_v2  ;;  %v77_v13 = vld [vmem:[#allocation2 + $0x150] sm:$0xff]  ;;  %v111_v48 = vsub.s32 0, %v110_v47  ;;  %v115_v50 = vsub.s32 1, %v110_v47  ;;  %v123_v53 = vsub.s32 3, %v110_v47 }
  0x24   :  { %333 = vmatprep.subr.bf16.mxu0 %v332_v45  ;;  %v96_v11 = vld [vmem:[#allocation2 + $0x1e8] sm:$0xff]  ;;  %v81_v14 = vld [vmem:[#allocation2 + $0x170] sm:$0xff]  ;;  %312 = vmatprep.mubr.msk.f32.mxu1 %vm129_vm0, %v34_v4  ;;  %v86_v15 = vld [vmem:[#allocation2 + $0x198] sm:$0xff]  ;;  %v342_v17 = vpack.c.bf16 %v87_v8, %v83_v7 }
  0x25   :  { %367 = vmatpush1.bf16.msra.mxu1 %v366_v61  ;;  %v90_v16 = vld [vmem:[#allocation2 + $0x1b8] sm:$0xff]  ;;  %v344_v18 = vpack.c.bf16 %v96_v11, %v92_v9  ;;  %v91_v19 = vld [vmem:[#allocation2 + $0x1c0] sm:$0xff]  ;;  %v100_v21 = vld [vmem:[#allocation2 + $0x208] sm:$0xff]  ;;  %v374_v22 = vpack.c.bf16 %v81_v14, %v77_v13  ;;  %v119_v61 = vsub.s32 2, %v110_v47 }
  0x26   :  { %369 = vmatprep.subr.bf16.mxu1 %v368_v63  ;;  %v95_v20 = vld [vmem:[#allocation2 + $0x1e0] sm:$0xff]  ;;  %v104_v23 = vld [vmem:[#allocation2 + $0x228] sm:$0xff]  ;;  %v376_v24 = vpack.c.bf16 %v90_v16, %v86_v15  ;;  %v85_v25 = vld [vmem:[#allocation2 + $0x190] sm:$0xff] }
  0x27   :  { %335 = vmatpush1.bf16.msra.mxu0 %v334_v54  ;;  %v89_v26 = vld [vmem:[#allocation2 + $0x1b0] sm:$0xff]  ;;  %v94_v27 = vld [vmem:[#allocation2 + $0x1d8] sm:$0xff]  ;;  %v346_v29 = vpack.c.bf16 %v95_v20, %v91_v19  ;;  %v348_v30 = vpack.c.bf16 %v104_v23, %v100_v21  ;;  %v99_v31 = vld [vmem:[#allocation2 + $0x200] sm:$0xff] }
  0x28   :  { %337 = vmatprep.subr.bf16.mxu0 %v336_v57  ;;  %v98_v28 = vld [vmem:[#allocation2 + $0x1f8] sm:$0xff]  ;;  %v103_v32 = vld [vmem:[#allocation2 + $0x220] sm:$0xff]  ;;  %v378_v33 = vpack.c.bf16 %v89_v26, %v85_v25  ;;  %v93_v35 = vld [vmem:[#allocation2 + $0x1d0] sm:$0xff] }
  0x29   :  { %371 = vmatpush1.bf16.msra.mxu1 %v370_v10  ;;  %v380_v34 = vpack.c.bf16 %v98_v28, %v94_v27  ;;  %v97_v36 = vld [vmem:[#allocation2 + $0x1f0] sm:$0xff]  ;;  %v102_v37 = vld [vmem:[#allocation2 + $0x218] sm:$0xff]  ;;  %v350_v39 = vpack.c.bf16 %v103_v32, %v99_v31  ;;  %v33_v44 = vld [vmem:[%s496_s0] sm:$0xff] }
  0x2a   :  { %373 = vmatprep.subr.bf16.mxu1 %v372_v12  ;;  %v106_v38 = vld [vmem:[#allocation2 + $0x238] sm:$0xff]  ;;  %v382_v40 = vpack.c.bf16 %v97_v36, %v93_v35  ;;  %v101_v42 = vld [vmem:[#allocation2 + $0x210] sm:$0xff]  ;;  %v107_v49 = vld [vmem:[%s499_s3] sm:$0xf] }
  0x2b   :  { %339 = vmatpush1.bf16.msra.mxu0 %v338_v5  ;;  %v384_v41 = vpack.c.bf16 %v106_v38, %v102_v37  ;;  %v105_v43 = vld [vmem:[#allocation2 + $0x230] sm:$0xff]  ;;  %v112_v51 = vrot.slane %v107_v49, %v111_v48  ;;  %v116_v52 = vrot.slane %v107_v49, %v115_v50  ;;  %v124_v59 = vrot.slane %v107_v49, %v123_v53  ;;  %v294_v10 = vld [vmem:[%s497_s1] sm:$0xff] }
  0x2c   :  { %341 = vmatprep.subr.bf16.mxu0 %v340_v6  ;;  %v386_v45 = vpack.c.bf16 %v105_v43, %v101_v42  ;;  %v120_v1 = vrot.slane %v107_v49, %v119_v61 }
  0x2d   :  { %375 = vmatpush1.bf16.msra.mxu1 %v374_v22 }
  0x2e   :  { %377 = vmatprep.subr.bf16.mxu1 %v376_v24 }
  0x2f   :  { %343 = vmatpush1.bf16.msra.mxu0 %v342_v17 }
  0x30   :  { %345 = vmatprep.subr.bf16.mxu0 %v344_v18 }
  0x31   :  { %379 = vmatpush1.bf16.msra.mxu1 %v378_v33 }
  0x32   :  { %381 = vmatprep.subr.bf16.mxu1 %v380_v34 }
  0x33   :  { %347 = vmatpush1.bf16.msra.mxu0 %v346_v29 }
  0x34   :  { %349 = vmatprep.subr.bf16.mxu0 %v348_v30 }
  0x35   :  { %383 = vmatpush1.bf16.msra.mxu1 %v382_v40 }
  0x36   :  { %385 = vmatprep.subr.bf16.mxu1 %v384_v41 }
  0x37   :  { %351 = vmatpush1.bf16.msra.mxu0 %v350_v39 }
  0x39   :  { %387 = vmatpush1.bf16.msra.mxu1 %v386_v45 }
  0x3a   :  { %198 = vmatmul.mubr.f32.vlgmr.msra.gmra.mrb[0].mxu0 %v33_v44 }
  0x3c   :  { %269 = vmatmul.mubr.f32.vlgmr.msra.gmra.mrb[0].mxu1 %v33_v44 }
 0x10d   :  { %v199_v54 = vpop.f32.mrb[0].mxu0 }
 0x10e   :  { %v200_v55 = vadd.f32 %v199_v54, %v112_v51  ;;  %v201_v56 = vpop.f32.mrb[1].mxu0 }
 0x10f   :  { %v202_v57 = vadd.f32 %v201_v56, %v116_v52  ;;  %v270_v62 = vpop.f32.mrb[0].mxu1 }
 0x110   :  { %v313_v58 = vmul.f32 -1.442695, %v200_v55  ;;  %v272_v63 = vpop.f32.mrb[1].mxu1  ;;  %v271_v3 = vadd.f32 %v270_v62, %v120_v1 }
 0x111   :  { %v314_v60 = vmul.f32 -1.442695, %v202_v57  ;;  %v273_v0 = vadd.f32 %v272_v63, %v124_v59 }
 0x112   :  { %391 = vpow2.f32 %v313_v58 }
 0x113   :  { %393 = vpow2.f32 %v314_v60  ;;  %v315_v2 = vmul.f32 -1.442695, %v273_v0 }
 0x115   :  { %395 = vpow2.f32 %v315_v2 }
 0x116   :  { %397 = vtanh.f32 %v271_v3 }
 0x11c   :  { %v392_v4 = vpop.eup %391 }
 0x11d   :  { %v394_v5 = vpop.eup %393  ;;  %v278_v6 = vadd.f32 1.0, %v392_v4 }
 0x11e   :  { %v284_v7 = vadd.f32 1.0, %v394_v5 }
 0x11f   :  { %399 = vrcp.f32 %v278_v6  ;;  %v396_v8 = vpop.eup %395 }
 0x120   :  { %401 = vrcp.f32 %v284_v7  ;;  %v398_v9 = vpop.eup %397  ;;  %v291_v12 = vadd.f32 1.0, %v396_v8 }
 0x122   :  { %403 = vrcp.f32 %v291_v12 }
 0x129   :  { %v400_v11 = vpop.eup %399 }
 0x12a   :  { %v402_v13 = vpop.eup %401  ;;  %v296_v14 = vmul.f32 %v400_v11, %v398_v9 }
 0x12b   :  { %v295_v15 = vmul.f32 %v402_v13, %v294_v10 }
 0x12c   :  { %v404_v17 = vpop.eup %403 }
 0x12d   :  { %v297_v16 = vadd.f32 %v296_v14, %v295_v15 }
 0x12f   :  { %405 = vtanh.f32 %v297_v16  ;;  %300 = vst [vmem:[%s501_s5] sm:$0xff] %v297_v16 }
 0x139   :  { %v406_v18 = vpop.eup %405 }
 0x13a   :  { %v299_v19 = vmul.f32 %v406_v18, %v404_v17 }
 0x13c   :  { %301 = vst [vmem:[%s500_s4] sm:$0xff] %v299_v19 }
 0x13d   :  { %310 = vsyncpa [#allocation3], 1 }

</bundles_post_ra>
